<compile_context>
chip_gen: v7x
topology: tpu7x:2x2x1
jax: 0.10.0
libtpu: 0.0.40
codegen_flags: <defaults>
</compile_context>

<pallas_src>
import functools

import jax
import jax.numpy as jnp
import numpy as np
from jax.experimental import pallas as pl
from jax.experimental.pallas import tpu as pltpu

_NEG_INF = -1e30
_MAX_TILE_ROWS = 4096  # ~1-2 MiB of activations per tile; amortizes step cost


def _round_up(x, m):
    return ((x + m - 1) // m) * m


def _actor_kernel(x_ref,
                  w1_ref, b1_ref,
                  w2_ref, b2_ref,
                  w3_ref, b3_ref,
                  w4_ref, b4_ref,
                  *rest,
                  sample: bool):
    """Fused actor forward for one batch tile.

    MLP -> padded-lane action head -> softmax stats -> (exponential-race)
    sample or argmax mode -> chosen log-prob.  Padded action lanes carry a
    -1e30 bias so exp(z) == 0 there: they never win and add 0 to the denom.
    """
    if sample:
        inv_e_ref, act_ref, lp_ref = rest
    else:
        act_ref, lp_ref = rest

    x = x_ref[...]
    h = jnp.maximum(
        jnp.dot(x, w1_ref[...], preferred_element_type=jnp.float32) + b1_ref[...], 0.0)
    h = jnp.maximum(
        jnp.dot(h, w2_ref[...], preferred_element_type=jnp.float32) + b2_ref[...], 0.0)
    h = jnp.maximum(
        jnp.dot(h, w3_ref[...], preferred_element_type=jnp.float32) + b3_ref[...], 0.0)
    logits = (jnp.dot(h, w4_ref[...], preferred_element_type=jnp.float32)
              + b4_ref[...])                                    # (TB, A_pad)

    # numerically-stable softmax statistics over the lane-dense action axis
    m = jnp.max(logits, axis=-1, keepdims=True)                 # (TB, 1)
    z = logits - m                                              # max lane == 0
    p = jnp.exp(z)                                              # padded lanes -> 0
    lse = jnp.log(jnp.sum(p, axis=-1, keepdims=True))           # (TB, 1)

    a_pad = logits.shape[-1]
    lane = jax.lax.broadcasted_iota(jnp.int32, logits.shape, 1)

    if sample:
        # exponential race: argmax_i p_i / E_i  ~  Categorical(p).
        # inv_e (= 1/E) is precomputed in the wrapper; padded lanes have p == 0
        # so their score is 0 and can never beat the max lane (score >= inv_e>0).
        score = p * inv_e_ref[...]
        best = jnp.max(score, axis=-1, keepdims=True)
        actions = jnp.min(jnp.where(score == best, lane, a_pad),
                          axis=-1, keepdims=True)               # (TB, 1) int32
        chosen_z = jnp.sum(jnp.where(lane == actions, z, 0.0),
                           axis=-1, keepdims=True)
        lp = chosen_z - lse
    else:
        # mode(): argmax(logits); the chosen lane has z == 0 so log-prob = -lse.
        actions = jnp.min(jnp.where(logits == m, lane, a_pad),
                          axis=-1, keepdims=True)
        lp = -lse

    # TODO(synk): if xprof shows the (tb,1) masked stores exposed, pack both
    # outputs into one lane-dense (1, tb) row per tile instead.
    act_ref[...] = actions.astype(jnp.int32)
    lp_ref[...] = lp


@functools.partial(jax.jit, static_argnames=("deterministic",))
def actor_forward(x, params, seed, deterministic=False):
    """x: (B, input_dim) f32 -> (actions (B,1) int32, log_probs (B,1) f32)."""
    (w1, b1), (w2, b2), (w3, b3), (w4, b4) = params
    B, input_dim = x.shape
    a_pad = w4.shape[1]

    # Big tiles (fewer grid steps), but guarantee >= 2 steps for large B so
    # v7x's two TensorCores both get work (no-op on v5e / v6e).
    tb = min(_MAX_TILE_ROWS, _round_up(max((B + 1) // 2, 1), 8))
    b_pad = _round_up(B, tb)
    if b_pad != B:
        x = jnp.pad(x, ((0, b_pad - B), (0, 0)))
    num_tiles = b_pad // tb

    def tile_map(i):                  # x / noise / outputs walk the batch
        return (i, 0)

    def resident(arr):                # DMA'd once, stays VMEM-resident
        return pl.BlockSpec(arr.shape, lambda i: (0, 0))

    in_specs = [
        pl.BlockSpec((tb, input_dim), tile_map),
        resident(w1), resident(b1),
        resident(w2), resident(b2),
        resident(w3), resident(b3),
        resident(w4), resident(b4),
    ]
    args = [x, w1, b1, w2, b2, w3, b3, w4, b4]

    if not deterministic:
        # Noise generated host/XLA-side (the in-kernel HW PRNG has no
        # interpret-mode lowering).  inv_e = 1/Exponential(1); the max() guard
        # keeps it finite so padded lanes (p == 0) stay at score 0, never NaN.
        key = jax.random.PRNGKey(seed)
        e = jax.random.exponential(key, (b_pad, a_pad), dtype=jnp.float32)
        inv_e = 1.0 / jnp.maximum(e, 1e-20)
        in_specs.append(pl.BlockSpec((tb, a_pad), tile_map))
        args.append(inv_e)

    weight_bytes = sum(int(np.prod(a.shape)) * 4
                       for a in (w1, b1, w2, b2, w3, b3, w4, b4))
    noise_bytes = 0 if deterministic else b_pad * a_pad * 4
    cost = pl.CostEstimate(
        flops=2 * b_pad * (input_dim * 64 + 64 * 128 + 128 * 64 + 64 * a_pad),
        transcendentals=b_pad * (a_pad + 1),
        bytes_accessed=4 * b_pad * (input_dim + 2) + noise_bytes + weight_bytes)

    actions, log_probs = pl.pallas_call(
        functools.partial(_actor_kernel, sample=not deterministic),
        out_shape=(jax.ShapeDtypeStruct((b_pad, 1), jnp.int32),
                   jax.ShapeDtypeStruct((b_pad, 1), jnp.float32)),
        grid=(num_tiles,),
        in_specs=in_specs,
        out_specs=[pl.BlockSpec((tb, 1), tile_map),
                   pl.BlockSpec((tb, 1), tile_map)],
        compiler_params=pltpu.CompilerParams(
            dimension_semantics=("parallel",)),
        cost_estimate=cost,
    )(*args)

    return actions[:B], log_probs[:B]


def _orthogonal(key, out_dim, in_dim, gain):
    """Deterministic orthogonal init (mirrors torch.nn.init.orthogonal_)."""
    a = jax.random.normal(key, (max(out_dim, in_dim), min(out_dim, in_dim)),
                          dtype=jnp.float32)
    q, r = jnp.linalg.qr(a)
    q = q * jnp.sign(jnp.diag(r))[None, :]
    if out_dim < in_dim:
        q = q.T
    return (gain * q[:out_dim, :in_dim]).astype(jnp.float32)


def init_actor_params(key, input_dim, action_dim):
    """Returns [(W^T, b), ...] with W^T shaped (in, out), b shaped (1, out).
    The action head is padded to a multiple of 128 lanes; padded lanes carry
    zero weights and a -1e30 bias so they are inert."""
    k1, k2, k3, k4 = jax.random.split(key, 4)
    params = []
    for k, d_in, d_out, gain in [(k1, input_dim, 64, np.sqrt(2)),
                                 (k2, 64, 128, np.sqrt(2)),
                                 (k3, 128, 64, np.sqrt(2))]:
        w = _orthogonal(k, d_out, d_in, gain)               # (out, in) like torch
        params.append((w.T, jnp.zeros((1, d_out), jnp.float32)))

    a_pad = _round_up(action_dim, 128)
    w4 = _orthogonal(k4, action_dim, 64, 0.01).T            # (64, action_dim)
    w4 = jnp.zeros((64, a_pad), jnp.float32).at[:, :action_dim].set(w4)
    b4 = jnp.full((1, a_pad), _NEG_INF, jnp.float32).at[:, :action_dim].set(0.0)
    params.append((w4, b4))
    return params


# TODO(synk): evaluate_actions()/entropy, get_probs(), and the
# available_actions==0 masking branch of Categorical.forward are not part of
# forward() and are not ported.

if __name__ == "__main__":
    key = jax.random.PRNGKey(0)
    k_x, k_p = jax.random.split(key)

    batch, input_dim, action_dim = 6, 32, 6          # exercises the ragged-tail pad
    x = jax.random.normal(k_x, (batch, input_dim), dtype=jnp.float32)
    params = init_actor_params(k_p, input_dim, action_dim)

    # pure-JAX reference of the same MLP + action head
    (w1, b1), (w2, b2), (w3, b3), (w4, b4) = params
    h = jnp.maximum(x @ w1 + b1, 0.0)
    h = jnp.maximum(h @ w2 + b2, 0.0)
    h = jnp.maximum(h @ w3 + b3, 0.0)
    logits_ref = h @ w4[:, :action_dim] + b4[:, :action_dim]
    logp_ref_all = jax.nn.log_softmax(logits_ref, axis=-1)
    ref_mode = jnp.argmax(logits_ref, axis=-1)

    # 1) deterministic (mode) path: exact check of the fused MLP / log-softmax
    actions_det, logp_det = actor_forward(x, params, 0, deterministic=True)
    jax.block_until_ready((actions_det, logp_det))
    assert actions_det.shape == (batch, 1) and logp_det.shape == (batch, 1)
    np.testing.assert_array_equal(np.asarray(actions_det[:, 0]), np.asarray(ref_mode))
    np.testing.assert_allclose(
        np.asarray(logp_det[:, 0]),
        np.asarray(logp_ref_all[jnp.arange(batch), ref_mode]),
        rtol=1e-5, atol=1e-5)

    # 2) stochastic path: actions in range, log-prob consistent with reference
    actions_s, logp_s = actor_forward(x, params, 1234, deterministic=False)
    jax.block_until_ready((actions_s, logp_s))
    a = np.asarray(actions_s[:, 0])
    assert ((a >= 0) & (a < action_dim)).all()
    np.testing.assert_allclose(
        np.asarray(logp_s[:, 0]),
        np.asarray(logp_ref_all[np.arange(batch), a]),
        rtol=1e-5, atol=1e-5)

    print("KERNEL_OK")
</pallas_src>

<mosaic_0001>
module attributes {stable_mosaic.version = 11 : i64} {
  func.func @_actor_kernel(%arg0: i32, %arg1: memref<8x32xf32, #tpu.memory_space<vmem>>, %arg2: memref<32x64xf32, #tpu.memory_space<vmem>>, %arg3: memref<1x64xf32, #tpu.memory_space<vmem>>, %arg4: memref<64x128xf32, #tpu.memory_space<vmem>>, %arg5: memref<1x128xf32, #tpu.memory_space<vmem>>, %arg6: memref<128x64xf32, #tpu.memory_space<vmem>>, %arg7: memref<1x64xf32, #tpu.memory_space<vmem>>, %arg8: memref<64x128xf32, #tpu.memory_space<vmem>>, %arg9: memref<1x128xf32, #tpu.memory_space<vmem>>, %arg10: memref<8x1xi32, #tpu.memory_space<vmem>>, %arg11: memref<8x1xf32, #tpu.memory_space<vmem>>) attributes {dimension_semantics = [#tpu.dimension_semantics<parallel>], iteration_bounds = array<i64: 1>, scalar_prefetch = 0 : i64, scratch_operands = 0 : i64, tpu.core_type = #tpu.core_type<tc>, window_params = [{transform_indices = @transform_0, window_bounds = array<i64: 8, 32>}, {pipeline_mode = #tpu.pipeline_mode<synchronous>, transform_indices = @transform_1, window_bounds = array<i64: 32, 64>}, {pipeline_mode = #tpu.pipeline_mode<synchronous>, transform_indices = @transform_2, window_bounds = array<i64: 1, 64>}, {pipeline_mode = #tpu.pipeline_mode<synchronous>, transform_indices = @transform_3, window_bounds = array<i64: 64, 128>}, {pipeline_mode = #tpu.pipeline_mode<synchronous>, transform_indices = @transform_4, window_bounds = array<i64: 1, 128>}, {pipeline_mode = #tpu.pipeline_mode<synchronous>, transform_indices = @transform_5, window_bounds = array<i64: 128, 64>}, {pipeline_mode = #tpu.pipeline_mode<synchronous>, transform_indices = @transform_6, window_bounds = array<i64: 1, 64>}, {pipeline_mode = #tpu.pipeline_mode<synchronous>, transform_indices = @transform_7, window_bounds = array<i64: 64, 128>}, {pipeline_mode = #tpu.pipeline_mode<synchronous>, transform_indices = @transform_8, window_bounds = array<i64: 1, 128>}, {transform_indices = @transform_9, window_bounds = array<i64: 8, 1>}, {transform_indices = @transform_10, window_bounds = array<i64: 8, 1>}]} {
    %c0 = arith.constant 0 : index
    %c0_0 = arith.constant 0 : index
    %0 = vector.load %arg1[%c0, %c0_0] : memref<8x32xf32, #tpu.memory_space<vmem>>, vector<8x32xf32>
    %c0_1 = arith.constant 0 : index
    %c0_2 = arith.constant 0 : index
    %1 = vector.load %arg2[%c0_1, %c0_2] : memref<32x64xf32, #tpu.memory_space<vmem>>, vector<32x64xf32>
    %cst = arith.constant dense<0.000000e+00> : vector<8x64xf32>
    %2 = tpu.matmul %0, %1, %cst {dimension_numbers = #tpu.dot_dimension_numbers<[1], [0], [0], [1], [0, 0, 1, 1], [], []>} : vector<8x32xf32>, vector<32x64xf32>, vector<8x64xf32> -> vector<8x64xf32>
    %c0_3 = arith.constant 0 : index
    %c0_4 = arith.constant 0 : index
    %3 = vector.load %arg3[%c0_3, %c0_4] : memref<1x64xf32, #tpu.memory_space<vmem>>, vector<1x64xf32>
    %4 = vector.broadcast %3 : vector<1x64xf32> to vector<8x64xf32>
    %5 = arith.addf %2, %4 : vector<8x64xf32>
    %cst_5 = arith.constant 0.000000e+00 : f32
    %6 = vector.broadcast %cst_5 : f32 to vector<8x64xf32>
    %7 = arith.maximumf %5, %6 : vector<8x64xf32>
    %c0_6 = arith.constant 0 : index
    %c0_7 = arith.constant 0 : index
    %8 = vector.load %arg4[%c0_6, %c0_7] : memref<64x128xf32, #tpu.memory_space<vmem>>, vector<64x128xf32>
    %cst_8 = arith.constant dense<0.000000e+00> : vector<8x128xf32>
    %9 = tpu.matmul %7, %8, %cst_8 {dimension_numbers = #tpu.dot_dimension_numbers<[1], [0], [0], [1], [0, 0, 1, 1], [], []>} : vector<8x64xf32>, vector<64x128xf32>, vector<8x128xf32> -> vector<8x128xf32>
    %c0_9 = arith.constant 0 : index
    %c0_10 = arith.constant 0 : index
    %10 = vector.load %arg5[%c0_9, %c0_10] : memref<1x128xf32, #tpu.memory_space<vmem>>, vector<1x128xf32>
    %11 = vector.broadcast %10 : vector<1x128xf32> to vector<8x128xf32>
    %12 = arith.addf %9, %11 : vector<8x128xf32>
    %cst_11 = arith.constant 0.000000e+00 : f32
    %13 = vector.broadcast %cst_11 : f32 to vector<8x128xf32>
    %14 = arith.maximumf %12, %13 : vector<8x128xf32>
    %c0_12 = arith.constant 0 : index
    %c0_13 = arith.constant 0 : index
    %15 = vector.load %arg6[%c0_12, %c0_13] : memref<128x64xf32, #tpu.memory_space<vmem>>, vector<128x64xf32>
    %cst_14 = arith.constant dense<0.000000e+00> : vector<8x64xf32>
    %16 = tpu.matmul %14, %15, %cst_14 {dimension_numbers = #tpu.dot_dimension_numbers<[1], [0], [0], [1], [0, 0, 1, 1], [], []>} : vector<8x128xf32>, vector<128x64xf32>, vector<8x64xf32> -> vector<8x64xf32>
    %c0_15 = arith.constant 0 : index
    %c0_16 = arith.constant 0 : index
    %17 = vector.load %arg7[%c0_15, %c0_16] : memref<1x64xf32, #tpu.memory_space<vmem>>, vector<1x64xf32>
    %18 = vector.broadcast %17 : vector<1x64xf32> to vector<8x64xf32>
    %19 = arith.addf %16, %18 : vector<8x64xf32>
    %cst_17 = arith.constant 0.000000e+00 : f32
    %20 = vector.broadcast %cst_17 : f32 to vector<8x64xf32>
    %21 = arith.maximumf %19, %20 : vector<8x64xf32>
    %c0_18 = arith.constant 0 : index
    %c0_19 = arith.constant 0 : index
    %22 = vector.load %arg8[%c0_18, %c0_19] : memref<64x128xf32, #tpu.memory_space<vmem>>, vector<64x128xf32>
    %cst_20 = arith.constant dense<0.000000e+00> : vector<8x128xf32>
    %23 = tpu.matmul %21, %22, %cst_20 {dimension_numbers = #tpu.dot_dimension_numbers<[1], [0], [0], [1], [0, 0, 1, 1], [], []>} : vector<8x64xf32>, vector<64x128xf32>, vector<8x128xf32> -> vector<8x128xf32>
    %c0_21 = arith.constant 0 : index
    %c0_22 = arith.constant 0 : index
    %24 = vector.load %arg9[%c0_21, %c0_22] : memref<1x128xf32, #tpu.memory_space<vmem>>, vector<1x128xf32>
    %25 = vector.broadcast %24 : vector<1x128xf32> to vector<8x128xf32>
    %26 = arith.addf %23, %25 : vector<8x128xf32>
    %cst_23 = arith.constant dense<0xFF800000> : vector<8xf32>
    %27 = vector.multi_reduction <maximumf>, %26, %cst_23 [1] : vector<8x128xf32> to vector<8xf32>
    %28 = vector.shape_cast %27 : vector<8xf32> to vector<8x1xf32>
    %29 = vector.broadcast %28 : vector<8x1xf32> to vector<8x128xf32>
    %30 = arith.subf %26, %29 : vector<8x128xf32>
    %31 = math.exp %30 : vector<8x128xf32>
    %cst_24 = arith.constant dense<0.000000e+00> : vector<8xf32>
    %32 = vector.multi_reduction <add>, %31, %cst_24 [1] : vector<8x128xf32> to vector<8xf32>
    %33 = vector.shape_cast %32 : vector<8xf32> to vector<8x1xf32>
    %34 = math.log %33 : vector<8x1xf32>
    %35 = tpu.iota {dimensions = array<i32: 1>} : vector<8x128xi32>
    %36 = vector.broadcast %28 : vector<8x1xf32> to vector<8x128xf32>
    %37 = arith.cmpf oeq, %26, %36 : vector<8x128xf32>
    %c128_i32 = arith.constant 128 : i32
    %38 = vector.broadcast %c128_i32 : i32 to vector<8x128xi32>
    %39 = arith.select %37, %35, %38 : vector<8x128xi1>, vector<8x128xi32>
    %cst_25 = arith.constant dense<2147483647> : vector<8xi32>
    %40 = vector.multi_reduction <minsi>, %39, %cst_25 [1] : vector<8x128xi32> to vector<8xi32>
    %41 = vector.shape_cast %40 : vector<8xi32> to vector<8x1xi32>
    %cst_26 = arith.constant 0.000000e+00 : f32
    %42 = vector.broadcast %cst_26 : f32 to vector<8x1xf32>
    %43 = arith.subf %42, %34 : vector<8x1xf32>
    %c0_27 = arith.constant 0 : index
    %c0_28 = arith.constant 0 : index
    %44 = vector.load %arg10[%c0_27, %c0_28] : memref<8x1xi32, #tpu.memory_space<vmem>>, vector<8x1xi32>
    tpu.vector_store %arg10[%c0_27, %c0_28], %41 {strides = array<i32>} : memref<8x1xi32, #tpu.memory_space<vmem>>, vector<8x1xi32>,
    %c0_29 = arith.constant 0 : index
    %c0_30 = arith.constant 0 : index
    %45 = vector.load %arg11[%c0_29, %c0_30] : memref<8x1xf32, #tpu.memory_space<vmem>>, vector<8x1xf32>
    tpu.vector_store %arg11[%c0_29, %c0_30], %43 {strides = array<i32>} : memref<8x1xf32, #tpu.memory_space<vmem>>, vector<8x1xf32>,
    return
  }
  func.func @transform_0(%arg0: i32) -> (i32, i32) {
    %c0_i32 = arith.constant 0 : i32
    %c0_i32_0 = arith.constant 0 : i32
    return %arg0, %c0_i32 : i32, i32
  }
  func.func @transform_1(%arg0: i32) -> (i32, i32) {
    %c0_i32 = arith.constant 0 : i32
    %c0_i32_0 = arith.constant 0 : i32
    %c0_i32_1 = arith.constant 0 : i32
    return %c0_i32, %c0_i32_0 : i32, i32
  }
  func.func @transform_2(%arg0: i32) -> (i32, i32) {
    %c0_i32 = arith.constant 0 : i32
    %c0_i32_0 = arith.constant 0 : i32
    %c0_i32_1 = arith.constant 0 : i32
    return %c0_i32, %c0_i32_0 : i32, i32
  }
  func.func @transform_3(%arg0: i32) -> (i32, i32) {
    %c0_i32 = arith.constant 0 : i32
    %c0_i32_0 = arith.constant 0 : i32
    %c0_i32_1 = arith.constant 0 : i32
    return %c0_i32, %c0_i32_0 : i32, i32
  }
  func.func @transform_4(%arg0: i32) -> (i32, i32) {
    %c0_i32 = arith.constant 0 : i32
    %c0_i32_0 = arith.constant 0 : i32
    %c0_i32_1 = arith.constant 0 : i32
    return %c0_i32, %c0_i32_0 : i32, i32
  }
  func.func @transform_5(%arg0: i32) -> (i32, i32) {
    %c0_i32 = arith.constant 0 : i32
    %c0_i32_0 = arith.constant 0 : i32
    %c0_i32_1 = arith.constant 0 : i32
    return %c0_i32, %c0_i32_0 : i32, i32
  }
  func.func @transform_6(%arg0: i32) -> (i32, i32) {
    %c0_i32 = arith.constant 0 : i32
    %c0_i32_0 = arith.constant 0 : i32
    %c0_i32_1 = arith.constant 0 : i32
    return %c0_i32, %c0_i32_0 : i32, i32
  }
  func.func @transform_7(%arg0: i32) -> (i32, i32) {
    %c0_i32 = arith.constant 0 : i32
    %c0_i32_0 = arith.constant 0 : i32
    %c0_i32_1 = arith.constant 0 : i32
    return %c0_i32, %c0_i32_0 : i32, i32
  }
  func.func @transform_8(%arg0: i32) -> (i32, i32) {
    %c0_i32 = arith.constant 0 : i32
    %c0_i32_0 = arith.constant 0 : i32
    %c0_i32_1 = arith.constant 0 : i32
    return %c0_i32, %c0_i32_0 : i32, i32
  }
  func.func @transform_9(%arg0: i32) -> (i32, i32) {
    %c0_i32 = arith.constant 0 : i32
    %c0_i32_0 = arith.constant 0 : i32
    return %arg0, %c0_i32 : i32, i32
  }
  func.func @transform_10(%arg0: i32) -> (i32, i32) {
    %c0_i32 = arith.constant 0 : i32
    %c0_i32_0 = arith.constant 0 : i32
    return %arg0, %c0_i32 : i32, i32
  }
}

</mosaic_0001>

<bundles_post_ra>
// kernel: actor_forward.1
= control target key start
LH: loop header
LB: loop body
LE: loop exit
PB: predicated region body
PF: predicated region fallthrough
CT: control target
= control target key end

     0   :  { %v624_v0 = vmov 0.0|0.0   ;;  %vm625_vm0 = vmmov 0   ;;  %v626_v4 = vmov 0.0   ;;  %vm46_vm1 = vcmask 261120   ;;  %s839_s1 = inlined_call_operand.vmem [shape: f32[32,64], index: 1, kind: input, shape index: {}]   ;;  %s840_s3 = inlined_call_operand.vmem [shape: f32[64,128], index: 3, kind: input, shape index: {}]   ;;  %s841_s0 = inlined_call_operand.vmem [shape: f32[8,32], index: 0, kind: input, shape index: {}]   ;;  %s842_s5 = inlined_call_operand.vmem [shape: f32[128,64], index: 5, kind: input, shape index: {}]   ;;  %s843_s2 = inlined_call_operand.vmem [shape: f32[1,64], index: 2, kind: input, shape index: {}]   ;;  %s844_s7 = inlined_call_operand.vmem [shape: f32[64,128], index: 7, kind: input, shape index: {}]   ;;  %s845_s4 = inlined_call_operand.vmem [shape: f32[1,128], index: 4, kind: input, shape index: {}]   ;;  %s846_s6 = inlined_call_operand.vmem [shape: f32[1,64], index: 6, kind: input, shape index: {}]   ;;  %s847_s8 = inlined_call_operand.vmem [shape: f32[1,128], index: 8, kind: input, shape index: {}]   ;;  %s848_s10 = inlined_call_operand.vmem [shape: f32[8,1], index: 10, kind: output, shape index: {1}]   ;;  %s849_s9 = inlined_call_operand.vmem [shape: s32[8,1], index: 9, kind: output, shape index: {0}]  }
   0x1   :  { %563 = vmatprep.subr.bf16.mxu0 %v624_v0  ;;  %v35_v1 = vld [vmem:[%s839_s1] sm:$0xff]  ;;  %v36_v2 = vld [vmem:[%s839_s1 + $0x8] sm:$0xff]  ;;  %v37_v3 = vld [vmem:[%s839_s1 + $0x10] sm:$0xff]  ;;  %487 = vmatprep.mubr.msk.f32.mxu0 %vm625_vm0, %v626_v4  ;;  %vm136_vm2 = vcmask 523264   ;;  %vm421_vm5 = vcmask 7168  }
   0x2   :  { %v564_v5 = vpack.c.bf16 %v36_v2, %v35_v1  ;;  %v38_v6 = vld [vmem:[%s839_s1 + $0x18] sm:$0xff]  ;;  %569 = vmatprep.subr.bf16.mxu1 %v624_v0  ;;  %v121_v7 = vld [vmem:[%s840_s3] sm:$0xff]  ;;  %506 = vmatprep.mubr.msk.f32.mxu1 %vm625_vm0, %v626_v4  ;;  %v122_v8 = vld [vmem:[%s840_s3 + $0x8] sm:$0xff] }
   0x3   :  { %v123_v9 = vld [vmem:[%s840_s3 + $0x10] sm:$0xff]  ;;  %v124_v10 = vld [vmem:[%s840_s3 + $0x18] sm:$0xff]  ;;  %v567_v11 = vpack.c.bf16 %v38_v6, %v37_v3  ;;  %v570_v12 = vpack.c.bf16 %v122_v8, %v121_v7  ;;  %v125_v14 = vld [vmem:[%s840_s3 + $0x20] sm:$0xff] }
   0x4   :  { %565 = vmatpush3.bf16.msra.mxu0 %v564_v5  ;;  %v573_v13 = vpack.c.bf16 %v124_v10, %v123_v9  ;;  %v126_v15 = vld [vmem:[%s840_s3 + $0x28] sm:$0xff]  ;;  %v34_v16 = vld [vmem:[%s841_s0] sm:$0xff]  ;;  %v127_v18 = vld [vmem:[%s840_s3 + $0x30] sm:$0xff] }
   0x5   :  { %566 = vmatprep.subr.bf16.mxu0 %v624_v0  ;;  %571 = vmatpush3.bf16.msra.mxu1 %v570_v12  ;;  %v576_v17 = vpack.c.bf16 %v126_v15, %v125_v14  ;;  %v128_v19 = vld [vmem:[%s840_s3 + $0x38] sm:$0xff]  ;;  %v211_v21 = vld [vmem:[%s842_s5] sm:$0xff]  ;;  %v212_v22 = vld [vmem:[%s842_s5 + $0x8] sm:$0xff]  ;;  %v402_v12 = vlaneseq }
   0x6   :  { %572 = vmatprep.subr.bf16.mxu1 %v624_v0  ;;  %v579_v20 = vpack.c.bf16 %v128_v19, %v127_v18  ;;  %v213_v23 = vld [vmem:[%s842_s5 + $0x10] sm:$0xff]  ;;  %v582_v24 = vpack.c.bf16 %v212_v22, %v211_v21  ;;  %v214_v25 = vld [vmem:[%s842_s5 + $0x18] sm:$0xff]  ;;  %v215_v27 = vld [vmem:[%s842_s5 + $0x20] sm:$0xff] }
   0x7   :  { %v585_v26 = vpack.c.bf16 %v214_v25, %v213_v23  ;;  %v216_v28 = vld [vmem:[%s842_s5 + $0x28] sm:$0xff]  ;;  %v217_v30 = vld [vmem:[%s842_s5 + $0x30] sm:$0xff]  ;;  %v218_v31 = vld [vmem:[%s842_s5 + $0x38] sm:$0xff] }
   0x8   :  { %568 = vmatpush3.bf16.msra.mxu0 %v567_v11  ;;  %v588_v29 = vpack.c.bf16 %v216_v28, %v215_v27  ;;  %v591_v32 = vpack.c.bf16 %v218_v31, %v217_v30  ;;  %v219_v33 = vld [vmem:[%s842_s5 + $0x40] sm:$0xff]  ;;  %v220_v34 = vld [vmem:[%s842_s5 + $0x48] sm:$0xff]  ;;  %v221_v36 = vld [vmem:[%s842_s5 + $0x50] sm:$0xff] }
   0x9   :  { %581 = vmatprep.subr.bf16.mxu0 %v624_v0  ;;  %574 = vmatpush3.bf16.msra.mxu1 %v573_v13  ;;  %v594_v35 = vpack.c.bf16 %v220_v34, %v219_v33  ;;  %v222_v37 = vld [vmem:[%s842_s5 + $0x58] sm:$0xff]  ;;  %v223_v39 = vld [vmem:[%s842_s5 + $0x60] sm:$0xff]  ;;  %v224_v40 = vld [vmem:[%s842_s5 + $0x68] sm:$0xff]  ;;  %v403_v13 = vand.u32 127, %v402_v12 }
   0xa   :  { %575 = vmatprep.subr.bf16.mxu1 %v624_v0  ;;  %v597_v38 = vpack.c.bf16 %v222_v37, %v221_v36  ;;  %v600_v41 = vpack.c.bf16 %v224_v40, %v223_v39  ;;  %v432_v42 = vld [vmem:[%s843_s2] ss:$0 sm:$0xff]  ;;  %v225_v47 = vld [vmem:[%s842_s5 + $0x70] sm:$0xff]  ;;  %v226_v48 = vld [vmem:[%s842_s5 + $0x78] sm:$0xff] }
   0xb   :  { %488 = vmatmul.mubr.msk.f32.vlgmr.msra.gmra.mrb[0].mxu0 %vm46_vm1, %v34_v16  ;;  %v603_v49 = vpack.c.bf16 %v226_v48, %v225_v47  ;;  %v305_v50 = vld [vmem:[%s844_s7] sm:$0xff]  ;;  %v306_v51 = vld [vmem:[%s844_s7 + $0x8] sm:$0xff]  ;;  %v307_v52 = vld [vmem:[%s844_s7 + $0x10] sm:$0xff] }
   0xc   :  { %541 = vmatprep.mubr.msk.f32.mxu0 %vm625_vm0, %v626_v4  ;;  %583 = vmatpush3.bf16.msra.mxu0 %v582_v24  ;;  %v606_v53 = vpack.c.bf16 %v306_v51, %v305_v50  ;;  %v308_v54 = vld [vmem:[%s844_s7 + $0x18] sm:$0xff]  ;;  %v309_v56 = vld [vmem:[%s844_s7 + $0x20] sm:$0xff]  ;;  %v310_v57 = vld [vmem:[%s844_s7 + $0x28] sm:$0xff] }
   0xd   :  { %577 = vmatpush3.bf16.msra.mxu1 %v576_v17  ;;  %584 = vmatprep.subr.bf16.mxu0 %v624_v0  ;;  %v609_v55 = vpack.c.bf16 %v308_v54, %v307_v52  ;;  %v612_v58 = vpack.c.bf16 %v310_v57, %v309_v56  ;;  %v434_v59 = vld [vmem:[%s845_s4] ss:$0 sm:$0xff]  ;;  %v311_v1 = vld [vmem:[%s844_s7 + $0x30] sm:$0xff]  ;;  %v312_v2 = vld [vmem:[%s844_s7 + $0x38] sm:$0xff] }
   0xe   :  { %578 = vmatprep.subr.bf16.mxu1 %v624_v0  ;;  %v615_v3 = vpack.c.bf16 %v312_v2, %v311_v1  ;;  %v437_v8 = vld [vmem:[%s847_s8] ss:$0 sm:$0xff] }
  0x10   :  { %586 = vmatpush3.bf16.msra.mxu0 %v585_v26 }
  0x11   :  { %580 = vmatpush3.bf16.msra.mxu1 %v579_v20  ;;  %587 = vmatprep.subr.bf16.mxu0 %v624_v0 }
  0x12   :  { %605 = vmatprep.subr.bf16.mxu1 %v624_v0 }
  0x14   :  { %589 = vmatpush3.bf16.msra.mxu0 %v588_v29 }
  0x15   :  { %590 = vmatprep.subr.bf16.mxu0 %v624_v0 }
  0x18   :  { %592 = vmatpush3.bf16.msra.mxu0 %v591_v32 }
  0x19   :  { %593 = vmatprep.subr.bf16.mxu0 %v624_v0 }
  0x1c   :  { %595 = vmatpush3.bf16.msra.mxu0 %v594_v35 }
  0x1d   :  { %596 = vmatprep.subr.bf16.mxu0 %v624_v0 }
  0x20   :  { %598 = vmatpush3.bf16.msra.mxu0 %v597_v38 }
  0x21   :  { %599 = vmatprep.subr.bf16.mxu0 %v624_v0 }
  0x24   :  { %601 = vmatpush3.bf16.msra.mxu0 %v600_v41 }
  0x25   :  { %602 = vmatprep.subr.bf16.mxu0 %v624_v0 }
  0x28   :  { %604 = vmatpush3.bf16.msra.mxu0 %v603_v49 }
  0xde   :  { %v116_v43 = vpop.f32.mrb[0].mxu0 }
  0xdf   :  { %v117_v44 = vadd.f32 %v432_v42, %v116_v43  ;;  %v489_v45 = vpop.f32.mrb[1].mxu0 }
  0xe1   :  { %v120_v46 = vmax.f32 %v117_v44, 0.0 }
  0xe3   :  { %507 = vmatmul.mubr.msk.f32.vlgmr.msra.gmra.mrb[0].mxu1 %vm136_vm2, %v120_v46 }
  0xe4   :  { %560 = vmatprep.mubr.msk.f32.mxu1 %vm625_vm0, %v626_v4  ;;  %607 = vmatpush3.bf16.msra.mxu1 %v606_v53 }
  0xe5   :  { %608 = vmatprep.subr.bf16.mxu1 %v624_v0 }
  0xe8   :  { %610 = vmatpush3.bf16.msra.mxu1 %v609_v55 }
  0xe9   :  { %611 = vmatprep.subr.bf16.mxu1 %v624_v0 }
  0xec   :  { %613 = vmatpush3.bf16.msra.mxu1 %v612_v58 }
  0xed   :  { %614 = vmatprep.subr.bf16.mxu1 %v624_v0  ;;  %v436_v0 = vld [vmem:[%s846_s6] ss:$0 sm:$0xff] }
  0xf0   :  { %616 = vmatpush3.bf16.msra.mxu1 %v615_v3 }
 0x1b6   :  { %v206_v60 = vpop.f32.mrb[0].mxu1 }
 0x1b7   :  { %v207_v61 = vadd.f32 %v434_v59, %v206_v60  ;;  %v508_v62 = vpop.f32.mrb[1].mxu1 }
 0x1b9   :  { %v210_v63 = vmax.f32 %v207_v61, 0.0 }
 0x1bb   :  { %542 = vmatmul.mubr.f32.vlgmr.msra.gmra.mrb[2].mxu0 %v210_v63 }
 0x28e   :  { %v300_v4 = vpop.f32.mrb[2].mxu0 }
 0x28f   :  { %v301_v5 = vadd.f32 %v436_v0, %v300_v4  ;;  %v543_v6 = vpop.f32.mrb[3].mxu0 }
 0x291   :  { %v304_v7 = vmax.f32 %v301_v5, 0.0 }
 0x293   :  { %561 = vmatmul.mubr.msk.f32.vlgmr.msra.gmra.mrb[2].mxu1 %vm136_vm2, %v304_v7 }
 0x366   :  { %v389_v9 = vpop.f32.mrb[2].mxu1 }
 0x367   :  { %v390_v10 = vadd.f32 %v437_v8, %v389_v9  ;;  %v562_v11 = vpop.f32.mrb[3].mxu1 }
 0x369   :  { %393 = vmax.xlane.f32.xlu0 %v390_v10 }
 0x3f6   :  { %v394_v14 = vpop.xlane.xlu0 %393 }
 0x3f7   :  { %v395_v15 = vsub.f32 %v390_v10, %v394_v14  ;;  %vm404_vm3 = vcmp.eq.f32.partialorder %v390_v10, %v394_v14 }
 0x3f8   :  { %v405_v16 = vsel %vm404_vm3, %v403_v13, 128 }
 0x3f9   :  { %v396_v17 = vmul.f32 1.442695, %v395_v15  ;;  %v407_v18 = vshra.s32 %v405_v16, 16  ;;  %v406_v21 = vand.u32 65535, %v405_v16 }
 0x3fb   :  { %v409_v19 = vcvt.s32.f32 %v407_v18  ;;  %620 = vpow2.f32 %v396_v17  ;;  %v408_v23 = vcvt.s32.f32 %v406_v21 }
 0x3fd   :  { %410 = vmin.xlane.f32.xlu0 %v409_v19 }
 0x405   :  { %v621_v20 = vpop.eup %620 }
 0x406   :  { %398 = vadd.xlane.f32.xlu1 %v621_v20 }
 0x48a   :  { %v411_v22 = vpop.xlane.xlu0 %410 }
 0x48b   :  { %vm412_vm4 = vcmp.eq.f32.partialorder %v409_v19, %v411_v22  ;;  %v417_v29 = vcvt.f32.s32 %v411_v22 }
 0x48c   :  { %v413_v24 = vsel %vm412_vm4, %v408_v23, inf }
 0x48d   :  { %414 = vmin.xlane.f32.xlu1 %v413_v24  ;;  %v418_v31 = vshll.u32 %v417_v29, 16 }
 0x493   :  { %v399_v25 = vpop.xlane.xlu1 %398 }
 0x494   :  { %622 = vlog2.f32 %v399_v25 }
 0x49e   :  { %v623_v26 = vpop.eup %622 }
 0x49f   :  { %v401_v27 = vmul.f32 0.6931472, %v623_v26 }
 0x4a1   :  { %v420_v28 = vsub.f32 0.0, %v401_v27 }
 0x4a3   :  { %423 = vst.msk [vmem:[%s848_s10] sm:$0xff] %vm421_vm5, %v420_v28 }
 0x51a   :  { %v415_v30 = vpop.xlane.xlu1 %414 }
 0x51b   :  { %v416_v32 = vcvt.f32.s32 %v415_v30 }
 0x51d   :  { %v419_v33 = vadd.s32 %v418_v31, %v416_v32 }
 0x51f   :  { %422 = vst.msk [vmem:[%s849_s9] sm:$0xff] %vm421_vm5, %v419_v33 }

</bundles_post_ra>
